<compile_context>
chip_gen: v7x
topology: tpu7x:2x2x1
jax: 0.10.0
libtpu: 0.0.40
codegen_flags: <defaults>
</compile_context>

<pallas_src>
import math
from functools import partial

import jax
import jax.numpy as jnp
import numpy as np
from jax.experimental import pallas as pl
from jax.experimental.pallas import tpu as pltpu

# ------------------------- model hyperparameters -------------------------
D_MODEL = 32
NHEAD = 4
HEAD_DIM = D_MODEL // NHEAD
L_TGT = 8     # number of queries
S_MEM = 16    # number of memory tokens
BATCH = 2
LN_EPS = 1e-5


# ----------------- trace-time constants (shape-only, baked) ----------------
def _attention_consts(L, S, N, E, nhead):
    """Packed [E+A+R, C] f32 constant: head mask, cross-batch bias, lane-tiler."""
    hd = E // nhead
    A, R = L * N, S * N
    C = nhead * R
    e = np.arange(E)[:, None]
    a = np.arange(A)[:, None]
    r = np.arange(R)[:, None]
    c = np.arange(C)[None, :]
    # head_maskT[e, c] = 1 iff feature e belongs to the head of block column c
    hmT = (e // hd == c // R).astype(np.float32)                                # [E, C]
    # additive cross-batch bias (rows are (l, n) order, block cols are (h, s, n))
    bias = np.where((a % N) == (c % N), 0.0, -1e30).astype(np.float32)          # [A, C]
    # 0/1 expansion matrix: tiles an [*, R] slab across the nhead lane blocks
    expand = (r == (c % R)).astype(np.float32)                                  # [R, C]
    return jnp.asarray(np.concatenate([hmT, bias, expand], axis=0))             # [E+A+R, C]


# ----------------------- fused layer (single kernel) ----------------------
@partial(jax.jit, static_argnames=("nhead",))
def cross_attention_layer(tgt, memory, query_pos, pos, params, *, nhead=NHEAD):
    """tgt/query_pos: [L, N, E]; memory/pos: [S, N, E] -> [L, N, E] (seq-first)."""
    # TODO(synk): memory_mask / memory_key_padding_mask (None path only here).
    L, N, E = tgt.shape
    S = memory.shape[0]
    A = L * N              # query rows, (l, n) order
    R = S * N              # key/value rows, (s, n) order
    C = nhead * R          # block-diagonal columns, (h, s, n) order

    consts = _attention_consts(L, S, N, E, nhead)   # [E+A+R, C]

    def kernel(tgt_ref, qpos_ref, mem_t_ref, pos_t_ref,
               wqo_ref, wkv_ref, vec_ref, const_ref, out_ref):
        tgt_rows = tgt_ref[...]                       # [A, E]
        q_in = tgt_rows + qpos_ref[...]               # query = tgt + query_pos
        mem_t = mem_t_ref[...]                        # [E, R]  (memory^T)
        # stacked transposed K/V inputs: rows 0:E = (memory+pos)^T, rows E:2E = memory^T
        kv_in_t = jnp.concatenate([mem_t + pos_t_ref[...], mem_t], axis=0)   # [2E, R]

        vecs = vec_ref[...]                           # [8, E] packed row vectors
        bq, bv, bo = vecs[0:1], vecs[1:2], vecs[2:3]  # bq is pre-scaled by 1/sqrt(hd)
        gamma, beta = vecs[3:4], vecs[4:5]

        hmT    = const_ref[0:E, :]                    # [E, C] head mask (lane-dense)
        bias   = const_ref[E:E + A, :]                # [A, C] cross-batch -1e30 bias
        expand = const_ref[E + A:E + A + R, :]        # [R, C] 0/1 lane-tiling matrix

        # Q projection (scale folded into the weight at init time).
        q = jnp.dot(q_in, wqo_ref[0], preferred_element_type=jnp.float32) + bq   # [A, E]
        # Fused K & V projections: block-diagonal weight, one MXU push.
        # Key bias is omitted (it cancels in the per-head softmax).
        kvT = jnp.dot(wkv_ref[...], kv_in_t, preferred_element_type=jnp.float32) # [2E, R]

        # Lane-tile k^T / v^T across the nhead blocks with one MXU push, then
        # apply the (constant) head mask -> lane-dense block-diagonal operands.
        tiled = jnp.dot(kvT, expand, preferred_element_type=jnp.float32)         # [2E, C]
        k_bdT = tiled[0:E] * hmT                                                 # [E, C]
        v_bdT = tiled[E:2 * E] * hmT                                             # [E, C]
        # Fused numer/denom RHS: rows 0:E -> attention numerator, rows E:2E -> denom.
        vmT = jnp.concatenate([v_bdT, hmT], axis=0)                              # [2E, C]

        # scores[a, c] = q_{head(c)}(a) . k_{head(c)}(c)  (single MXU push),
        # plus the baked cross-batch additive bias.
        s = jnp.dot(q, k_bdT, preferred_element_type=jnp.float32) + bias         # [A, C]

        # TODO(synk): shared row-max stabiliser (valid, cancels per head block);
        # switch to a per-head max if per-head score ranges can differ by ~88+.
        p = jnp.exp(s - jnp.max(s, axis=-1, keepdims=True))                      # [A, C]

        # One MXU push gives numerator and per-head denominator together.
        nd = jax.lax.dot_general(p, vmT, (((1,), (1,)), ((), ())),
                                 preferred_element_type=jnp.float32)             # [A, 2E]
        numer = nd[:, :E]
        denom = nd[:, E:]
        # Exact division (perf review: approx reciprocal bought nothing and cost
        # accuracy); tiny clamp guards against fully-underflowed head blocks.
        attn = numer / jnp.maximum(denom, 1e-30) + bv                            # [A, E]

        # Output projection + residual (dropout p=0 == identity) + LayerNorm.
        x = tgt_rows + jnp.dot(attn, wqo_ref[1],
                               preferred_element_type=jnp.float32) + bo
        mean = jnp.mean(x, axis=-1, keepdims=True)
        xc = x - mean
        var = jnp.mean(xc * xc, axis=-1, keepdims=True)
        y = xc * jax.lax.rsqrt(var + LN_EPS) * gamma + beta
        out_ref[...] = y.astype(out_ref.dtype)

    # Free row-major reshapes for the Q side; tiny [R,E]->[E,R] transposes for
    # the K/V side (fused by XLA around the call, ~4 KiB each).
    tgt_f = tgt.reshape(A, E)
    qpos_f = query_pos.reshape(A, E)
    mem_t = memory.reshape(R, E).T
    pos_t = pos.reshape(R, E).T

    vmem = lambda: pl.BlockSpec(memory_space=pltpu.MemorySpace.VMEM)
    out_f = pl.pallas_call(
        kernel,
        out_shape=jax.ShapeDtypeStruct((A, E), tgt.dtype),
        in_specs=[vmem() for _ in range(8)],
        out_specs=vmem(),
    )(tgt_f, qpos_f, mem_t, pos_t,
      params["w_qo"], params["w_kv"], params["vecs"], consts)

    return out_f.reshape(L, N, E)


# ----------------------- deterministic parameter init ---------------------
def xavier_uniform(key, shape):
    fan_out, fan_in = shape
    bound = math.sqrt(6.0 / (fan_in + fan_out))
    return jax.random.uniform(key, shape, jnp.float32, -bound, bound)


def init_params(key, d_model, nhead=NHEAD):
    k0, k1 = jax.random.split(key, 2)
    # nn.MultiheadAttention in_proj_weight is [3E, E]; xavier over the full matrix
    in_proj = xavier_uniform(k0, (3 * d_model, d_model))
    wq = in_proj[:d_model]
    wk = in_proj[d_model:2 * d_model]
    wv = in_proj[2 * d_model:]
    wo = xavier_uniform(k1, (d_model, d_model))

    scale = 1.0 / math.sqrt(d_model // nhead)
    zeros = jnp.zeros((d_model,), jnp.float32)
    ones = jnp.ones((d_model,), jnp.float32)

    # packed kernel inputs -------------------------------------------------
    # w_qo[0] = scale * Wq^T (row-major application), w_qo[1] = Wo^T
    w_qo = jnp.stack([scale * wq.T, wo.T], axis=0)                    # [2, E, E]
    # block-diagonal K/V weight, applied as  w_kv @ [k_in^T ; v_in^T]
    w_kv = (jnp.zeros((2 * d_model, 2 * d_model), jnp.float32)
            .at[:d_model, :d_model].set(wk)
            .at[d_model:, d_model:].set(wv))                          # [2E, 2E]
    # packed row vectors: 0 = scale*bq, 1 = bv, 2 = bo, 3 = gamma, 4 = beta
    vecs = (jnp.zeros((8, d_model), jnp.float32)
            .at[0].set(scale * zeros)
            .at[1].set(zeros)
            .at[2].set(zeros)
            .at[3].set(ones)
            .at[4].set(zeros))                                        # [8, E]

    return {
        "w_qo": w_qo, "w_kv": w_kv, "vecs": vecs,
        # unpacked copies for the pure-JAX reference
        "wq_t": wq.T, "wk_t": wk.T, "wv_t": wv.T, "wo_t": wo.T,
        "bq": zeros, "bk": zeros, "bv": zeros, "bo": zeros,
        "gamma": ones, "beta": zeros,
    }


# ------------------------------ pure-JAX reference -------------------------
def reference(tgt, memory, query_pos, pos, params):
    L, N, E = tgt.shape
    q_in = jnp.transpose(tgt + query_pos, (1, 0, 2))   # [N, L, E]
    k_in = jnp.transpose(memory + pos, (1, 0, 2))      # [N, S, E]
    v_in = jnp.transpose(memory, (1, 0, 2))
    q = q_in @ params["wq_t"] + params["bq"]
    k = k_in @ params["wk_t"] + params["bk"]
    v = v_in @ params["wv_t"] + params["bv"]
    qh = q.reshape(N, L, NHEAD, HEAD_DIM)
    kh = k.reshape(N, -1, NHEAD, HEAD_DIM)
    vh = v.reshape(N, -1, NHEAD, HEAD_DIM)
    s = jnp.einsum("nlhd,nshd->nhls", qh, kh) / math.sqrt(HEAD_DIM)
    p = jax.nn.softmax(s, axis=-1)
    o = jnp.einsum("nhls,nshd->nlhd", p, vh).reshape(N, L, E)
    o = o @ params["wo_t"] + params["bo"]
    x = jnp.transpose(tgt, (1, 0, 2)) + o
    mean = x.mean(-1, keepdims=True)
    var = ((x - mean) ** 2).mean(-1, keepdims=True)
    y = (x - mean) / jnp.sqrt(var + LN_EPS) * params["gamma"] + params["beta"]
    return jnp.transpose(y, (1, 0, 2))


# ---------------------------------- main -----------------------------------
if __name__ == "__main__":
    key = jax.random.PRNGKey(0)
    k_tgt, k_mem, k_qpos, k_pos, k_params = jax.random.split(key, 5)

    tgt = jax.random.normal(k_tgt, (L_TGT, BATCH, D_MODEL), jnp.float32)
    memory = jax.random.normal(k_mem, (S_MEM, BATCH, D_MODEL), jnp.float32)
    query_pos = jax.random.normal(k_qpos, (L_TGT, BATCH, D_MODEL), jnp.float32)
    pos = jax.random.normal(k_pos, (S_MEM, BATCH, D_MODEL), jnp.float32)

    params = init_params(k_params, D_MODEL)

    out = cross_attention_layer(tgt, memory, query_pos, pos, params)
    out = jax.block_until_ready(out)

    ref = reference(tgt, memory, query_pos, pos, params)
    # Tolerance covers MXU multi-pass f32 matmul rounding vs. the XLA einsum
    # reference; the softmax reciprocal is now exact.
    np.testing.assert_allclose(np.asarray(out), np.asarray(ref), rtol=1e-3, atol=1e-3)

    print("KERNEL_OK")
</pallas_src>

<mosaic_0001>
module attributes {stable_mosaic.version = 11 : i64} {
  func.func @kernel(%arg0: memref<16x32xf32, #tpu.memory_space<vmem>>, %arg1: memref<16x32xf32, #tpu.memory_space<vmem>>, %arg2: memref<32x32xf32, #tpu.memory_space<vmem>>, %arg3: memref<32x32xf32, #tpu.memory_space<vmem>>, %arg4: memref<2x32x32xf32, #tpu.memory_space<vmem>>, %arg5: memref<64x64xf32, #tpu.memory_space<vmem>>, %arg6: memref<8x32xf32, #tpu.memory_space<vmem>>, %arg7: memref<80x128xf32, #tpu.memory_space<vmem>>, %arg8: memref<16x32xf32, #tpu.memory_space<vmem>>) attributes {dimension_semantics = [], scalar_prefetch = 0 : i64, scratch_operands = 0 : i64, tpu.core_type = #tpu.core_type<tc>} {
    %c0 = arith.constant 0 : index
    %c0_0 = arith.constant 0 : index
    %0 = vector.load %arg0[%c0, %c0_0] : memref<16x32xf32, #tpu.memory_space<vmem>>, vector<16x32xf32>
    %c0_1 = arith.constant 0 : index
    %c0_2 = arith.constant 0 : index
    %1 = vector.load %arg1[%c0_1, %c0_2] : memref<16x32xf32, #tpu.memory_space<vmem>>, vector<16x32xf32>
    %2 = arith.addf %0, %1 : vector<16x32xf32>
    %c0_3 = arith.constant 0 : index
    %c0_4 = arith.constant 0 : index
    %3 = vector.load %arg2[%c0_3, %c0_4] : memref<32x32xf32, #tpu.memory_space<vmem>>, vector<32x32xf32>
    %c0_5 = arith.constant 0 : index
    %c0_6 = arith.constant 0 : index
    %4 = vector.load %arg3[%c0_5, %c0_6] : memref<32x32xf32, #tpu.memory_space<vmem>>, vector<32x32xf32>
    %5 = arith.addf %3, %4 : vector<32x32xf32>
    %6 = tpu.concatenate %5, %3 in 0 : vector<32x32xf32>, vector<32x32xf32> -> vector<64x32xf32>
    %c0_7 = arith.constant 0 : index
    %c0_8 = arith.constant 0 : index
    %7 = vector.load %arg6[%c0_7, %c0_8] : memref<8x32xf32, #tpu.memory_space<vmem>>, vector<8x32xf32>
    %8 = vector.extract_strided_slice %7 {offsets = [0, 0], sizes = [1, 32], strides = [1, 1]} : vector<8x32xf32> to vector<1x32xf32>
    %9 = vector.extract_strided_slice %7 {offsets = [1, 0], sizes = [1, 32], strides = [1, 1]} : vector<8x32xf32> to vector<1x32xf32>
    %10 = vector.extract_strided_slice %7 {offsets = [2, 0], sizes = [1, 32], strides = [1, 1]} : vector<8x32xf32> to vector<1x32xf32>
    %11 = vector.extract_strided_slice %7 {offsets = [3, 0], sizes = [1, 32], strides = [1, 1]} : vector<8x32xf32> to vector<1x32xf32>
    %12 = vector.extract_strided_slice %7 {offsets = [4, 0], sizes = [1, 32], strides = [1, 1]} : vector<8x32xf32> to vector<1x32xf32>
    %c0_9 = arith.constant 0 : index
    %c0_10 = arith.constant 0 : index
    %13 = vector.load %arg7[%c0_9, %c0_10] : memref<80x128xf32, #tpu.memory_space<vmem>>, vector<32x128xf32>
    %c32 = arith.constant 32 : index
    %c0_11 = arith.constant 0 : index
    %14 = vector.load %arg7[%c32, %c0_11] : memref<80x128xf32, #tpu.memory_space<vmem>>, vector<16x128xf32>
    %c48 = arith.constant 48 : index
    %c0_12 = arith.constant 0 : index
    %15 = vector.load %arg7[%c48, %c0_12] : memref<80x128xf32, #tpu.memory_space<vmem>>, vector<32x128xf32>
    %c0_13 = arith.constant 0 : index
    %c0_14 = arith.constant 0 : index
    %c0_15 = arith.constant 0 : index
    %16 = vector.load %arg4[%c0_13, %c0_14, %c0_15] : memref<2x32x32xf32, #tpu.memory_space<vmem>>, vector<1x32x32xf32>
    %17 = vector.shape_cast %16 : vector<1x32x32xf32> to vector<32x32xf32>
    %cst = arith.constant dense<0.000000e+00> : vector<16x32xf32>
    %18 = tpu.matmul %2, %17, %cst {dimension_numbers = #tpu.dot_dimension_numbers<[1], [0], [0], [1], [0, 0, 1, 1], [], []>} : vector<16x32xf32>, vector<32x32xf32>, vector<16x32xf32> -> vector<16x32xf32>
    %19 = vector.broadcast %8 : vector<1x32xf32> to vector<16x32xf32>
    %20 = arith.addf %18, %19 : vector<16x32xf32>
    %c0_16 = arith.constant 0 : index
    %c0_17 = arith.constant 0 : index
    %21 = vector.load %arg5[%c0_16, %c0_17] : memref<64x64xf32, #tpu.memory_space<vmem>>, vector<64x64xf32>
    %cst_18 = arith.constant dense<0.000000e+00> : vector<64x32xf32>
    %22 = tpu.matmul %21, %6, %cst_18 {dimension_numbers = #tpu.dot_dimension_numbers<[1], [0], [0], [1], [0, 0, 1, 1], [], []>} : vector<64x64xf32>, vector<64x32xf32>, vector<64x32xf32> -> vector<64x32xf32>
    %cst_19 = arith.constant dense<0.000000e+00> : vector<64x128xf32>
    %23 = tpu.matmul %22, %15, %cst_19 {dimension_numbers = #tpu.dot_dimension_numbers<[1], [0], [0], [1], [0, 0, 1, 1], [], []>} : vector<64x32xf32>, vector<32x128xf32>, vector<64x128xf32> -> vector<64x128xf32>
    %24 = vector.extract_strided_slice %23 {offsets = [0, 0], sizes = [32, 128], strides = [1, 1]} : vector<64x128xf32> to vector<32x128xf32>
    %25 = arith.mulf %24, %13 : vector<32x128xf32>
    %26 = vector.extract_strided_slice %23 {offsets = [32, 0], sizes = [32, 128], strides = [1, 1]} : vector<64x128xf32> to vector<32x128xf32>
    %27 = arith.mulf %26, %13 : vector<32x128xf32>
    %28 = tpu.concatenate %27, %13 in 0 : vector<32x128xf32>, vector<32x128xf32> -> vector<64x128xf32>
    %cst_20 = arith.constant dense<0.000000e+00> : vector<16x128xf32>
    %29 = tpu.matmul %20, %25, %cst_20 {dimension_numbers = #tpu.dot_dimension_numbers<[1], [0], [0], [1], [0, 0, 1, 1], [], []>} : vector<16x32xf32>, vector<32x128xf32>, vector<16x128xf32> -> vector<16x128xf32>
    %30 = arith.addf %29, %14 : vector<16x128xf32>
    %cst_21 = arith.constant dense<0xFF800000> : vector<16xf32>
    %31 = vector.multi_reduction <maximumf>, %30, %cst_21 [1] : vector<16x128xf32> to vector<16xf32>
    %32 = vector.shape_cast %31 : vector<16xf32> to vector<16x1xf32>
    %33 = vector.broadcast %32 : vector<16x1xf32> to vector<16x128xf32>
    %34 = arith.subf %30, %33 : vector<16x128xf32>
    %35 = math.exp %34 : vector<16x128xf32>
    %cst_22 = arith.constant dense<0.000000e+00> : vector<16x64xf32>
    %36 = tpu.matmul %35, %28, %cst_22 {dimension_numbers = #tpu.dot_dimension_numbers<[1], [1], [0], [0], [0, 0, 1, 0], [], []>} : vector<16x128xf32>, vector<64x128xf32>, vector<16x64xf32> -> vector<16x64xf32>
    %37 = vector.extract_strided_slice %36 {offsets = [0, 0], sizes = [16, 32], strides = [1, 1]} : vector<16x64xf32> to vector<16x32xf32>
    %38 = vector.extract_strided_slice %36 {offsets = [0, 32], sizes = [16, 32], strides = [1, 1]} : vector<16x64xf32> to vector<16x32xf32>
    %cst_23 = arith.constant 1.000000e-30 : f32
    %39 = vector.broadcast %cst_23 : f32 to vector<16x32xf32>
    %40 = arith.maximumf %38, %39 : vector<16x32xf32>
    %41 = arith.divf %37, %40 : vector<16x32xf32>
    %42 = vector.broadcast %9 : vector<1x32xf32> to vector<16x32xf32>
    %43 = arith.addf %41, %42 : vector<16x32xf32>
    %c1 = arith.constant 1 : index
    %c0_24 = arith.constant 0 : index
    %c0_25 = arith.constant 0 : index
    %44 = vector.load %arg4[%c1, %c0_24, %c0_25] : memref<2x32x32xf32, #tpu.memory_space<vmem>>, vector<1x32x32xf32>
    %45 = vector.shape_cast %44 : vector<1x32x32xf32> to vector<32x32xf32>
    %cst_26 = arith.constant dense<0.000000e+00> : vector<16x32xf32>
    %46 = tpu.matmul %43, %45, %cst_26 {dimension_numbers = #tpu.dot_dimension_numbers<[1], [0], [0], [1], [0, 0, 1, 1], [], []>} : vector<16x32xf32>, vector<32x32xf32>, vector<16x32xf32> -> vector<16x32xf32>
    %47 = arith.addf %0, %46 : vector<16x32xf32>
    %48 = vector.broadcast %10 : vector<1x32xf32> to vector<16x32xf32>
    %49 = arith.addf %47, %48 : vector<16x32xf32>
    %cst_27 = arith.constant dense<0.000000e+00> : vector<16xf32>
    %50 = vector.multi_reduction <add>, %49, %cst_27 [1] : vector<16x32xf32> to vector<16xf32>
    %51 = vector.shape_cast %50 : vector<16xf32> to vector<16x1xf32>
    %cst_28 = arith.constant 3.200000e+01 : f32
    %52 = vector.broadcast %cst_28 : f32 to vector<16x1xf32>
    %53 = arith.divf %51, %52 : vector<16x1xf32>
    %54 = vector.broadcast %53 : vector<16x1xf32> to vector<16x32xf32>
    %55 = arith.subf %49, %54 : vector<16x32xf32>
    %56 = arith.mulf %55, %55 : vector<16x32xf32>
    %cst_29 = arith.constant dense<0.000000e+00> : vector<16xf32>
    %57 = vector.multi_reduction <add>, %56, %cst_29 [1] : vector<16x32xf32> to vector<16xf32>
    %58 = vector.shape_cast %57 : vector<16xf32> to vector<16x1xf32>
    %cst_30 = arith.constant 3.200000e+01 : f32
    %59 = vector.broadcast %cst_30 : f32 to vector<16x1xf32>
    %60 = arith.divf %58, %59 : vector<16x1xf32>
    %cst_31 = arith.constant 9.99999974E-6 : f32
    %61 = vector.broadcast %cst_31 : f32 to vector<16x1xf32>
    %62 = arith.addf %60, %61 : vector<16x1xf32>
    %63 = math.rsqrt %62 : vector<16x1xf32>
    %64 = vector.broadcast %63 : vector<16x1xf32> to vector<16x32xf32>
    %65 = arith.mulf %55, %64 : vector<16x32xf32>
    %66 = vector.broadcast %11 : vector<1x32xf32> to vector<16x32xf32>
    %67 = arith.mulf %65, %66 : vector<16x32xf32>
    %68 = vector.broadcast %12 : vector<1x32xf32> to vector<16x32xf32>
    %69 = arith.addf %67, %68 : vector<16x32xf32>
    %c0_32 = arith.constant 0 : index
    %c0_33 = arith.constant 0 : index
    %70 = vector.load %arg8[%c0_32, %c0_33] : memref<16x32xf32, #tpu.memory_space<vmem>>, vector<16x32xf32>
    tpu.vector_store %arg8[%c0_32, %c0_33], %69 {strides = array<i32>} : memref<16x32xf32, #tpu.memory_space<vmem>>, vector<16x32xf32>,
    return
  }
}

</mosaic_0001>

<bundles_post_ra>
// kernel: cross_attention_layer.1
= control target key start
LH: loop header
LB: loop body
LE: loop exit
PB: predicated region body
PF: predicated region fallthrough
CT: control target
= control target key end

     0   :  { %13 = vsyncpa [#allocation3], 0  ;;  %s1413_s0 = inlined_call_operand.hbm [shape: f32[16,32], index: 0, kind: input, shape index: {}]   ;;  %s1414_s1 = inlined_call_operand.hbm [shape: f32[16,32], index: 1, kind: input, shape index: {}]   ;;  %s1415_s2 = inlined_call_operand.vmem [shape: f32[32,32], index: 2, kind: input, shape index: {}]   ;;  %s1416_s3 = inlined_call_operand.vmem [shape: f32[32,32], index: 3, kind: input, shape index: {}]   ;;  %s1417_s4 = inlined_call_operand.vmem [shape: f32[2,32,32], index: 4, kind: input, shape index: {}]   ;;  %s1418_s5 = inlined_call_operand.hbm [shape: f32[64,64], index: 5, kind: input, shape index: {}]   ;;  %s1419_s6 = inlined_call_operand.vmem [shape: f32[8,32], index: 6, kind: input, shape index: {}]   ;;  %s1420_s7 = inlined_call_operand.vmem [shape: f32[80,128], index: 7, kind: input, shape index: {}]   ;;  %s1421_s8 = inlined_call_operand.hbm [shape: f32[16,32], index: 8, kind: output, shape index: {}]  }
   0x1   :  { %14 = vsyncpa [#allocation6], 0 }
   0x2   :  { %15 = vsyncpa [#allocation4], 0  ;;  %s1163_s27 = smov [#allocation5]   ;;  %s1164_s29 = smov [#allocation2]  }
   0x3   :  { %s33_s28 = sshll.u32 %s1163_s27, 4  ;;  %s21_s30 = sshll.u32 %s1164_s29, 4  ;;  %s34_s28 = int_to_ptr.vmem [resolvable:$true] %s33_s28  ;;  %s1215_s30 = int_to_ptr.vmem [resolvable:$true] %s21_s30 }
   0x4   :  { %s1069_s11 = scalar_lea.hbm %s1414_s1, 256 }
   0x5   :  { %p1070_p0 = scmp.ne.s32.totalorder %s1414_s1, %s1069_s11  ;;  %p1073_p1 = scmp.lt.u32.totalorder %s1069_s11, %s1414_s1 }
   0x7   :  { %p1075_p2 = pnand %p1073_p1, %p1070_p0 }
   0x9   :  { %1078 = shalt.err (!%p1075_p2)
}
   0xa   :  { %s1079_s16 = scalar_lea.vmem %s34_s28, 256  ;;  %p1084_p4 = scmp.lt.s32.totalorder %s34_s28, %s34_s28 }
   0xb   :  { %p1080_p3 = scmp.ne.s32.totalorder %s34_s28, %s1079_s16  ;;  %p1085_p5 = scmp.lt.s32.totalorder %s1079_s16, %s1079_s16 }
   0xd   :  { %p1086_p6 = por %p1085_p5, %p1084_p4 }
   0xf   :  { %p1087_p7 = pnand %p1086_p6, %p1080_p3 }
  0x11   :  { %1090 = shalt.err (!%p1087_p7)
}
  0x12   :  { %s1165_s17 = smov 128   ;;  %s1166_s18 = smov 8  }
  0x13   :  { %39 = dma.hbm_to_vmem [thread:$0]  %s1414_s1, 256, %s34_s28, [#allocation6], %s1165_s17, %s1165_s17, %s1166_s18  }
  0x14   :  { %s1091_s23 = scalar_lea.hbm %s1413_s0, 256 }
  0x15   :  { %p1092_p8 = scmp.ne.s32.totalorder %s1413_s0, %s1091_s23  ;;  %p1095_p9 = scmp.lt.u32.totalorder %s1091_s23, %s1413_s0 }
  0x17   :  { %p1097_p10 = pnand %p1095_p9, %p1092_p8 }
  0x19   :  { %1100 = shalt.err (!%p1097_p10)
}
  0x1a   :  { %s1101_s29 = scalar_lea.vmem %s1215_s30, 256  ;;  %p1106_p12 = scmp.lt.s32.totalorder %s1215_s30, %s1215_s30 }
  0x1b   :  { %p1102_p11 = scmp.ne.s32.totalorder %s1215_s30, %s1101_s29  ;;  %p1107_p13 = scmp.lt.s32.totalorder %s1101_s29, %s1101_s29 }
  0x1d   :  { %p1108_p0 = por %p1107_p13, %p1106_p12 }
  0x1f   :  { %p1109_p1 = pnand %p1108_p0, %p1102_p11 }
  0x21   :  { %1112 = shalt.err (!%p1109_p1)
}
  0x22   :  { %27 = dma.hbm_to_vmem [thread:$0]  %s1413_s0, 256, %s1215_s30, [#allocation3], %s1165_s17, %s1165_s17, %s1166_s18  }
  0x23   :  { %s1167_s9 = smov [#allocation7]   ;;  %s1113_s13 = scalar_lea.hbm %s1418_s5, 1024 }
  0x24   :  { %s51_s10 = sshll.u32 %s1167_s9, 4  ;;  %p1114_p2 = scmp.ne.s32.totalorder %s1418_s5, %s1113_s13  ;;  %s52_s10 = int_to_ptr.vmem [resolvable:$true] %s51_s10 }
  0x25   :  { %p1117_p3 = scmp.lt.u32.totalorder %s1113_s13, %s1418_s5 }
  0x27   :  { %p1119_p4 = pnand %p1117_p3, %p1114_p2 }
  0x29   :  { %1122 = shalt.err (!%p1119_p4)
}
  0x2a   :  { %s1123_s20 = scalar_lea.vmem %s52_s10, 1024  ;;  %p1128_p6 = scmp.lt.s32.totalorder %s52_s10, %s52_s10 }
  0x2b   :  { %p1124_p5 = scmp.ne.s32.totalorder %s52_s10, %s1123_s20  ;;  %p1129_p7 = scmp.lt.s32.totalorder %s1123_s20, %s1123_s20 }
  0x2d   :  { %p1130_p8 = por %p1129_p7, %p1128_p6 }
  0x2f   :  { %p1131_p9 = pnand %p1130_p8, %p1124_p5 }
  0x31   :  { %1134 = shalt.err (!%p1131_p9)
}
  0x32   :  { %57 = dma.hbm_to_vmem [thread:$0]  %s1418_s5, 1024, %s52_s10, [#allocation6], %s1165_s17, %s1165_s17, %s1166_s18  }
  0x33   :  { %1157 = dma.done.wait [#allocation3], 256  }
  0x34   :  { %1158 = vsyncadd [#allocation3], 4294967040 }
  0x35   :  { %1159 = dma.done.wait [#allocation6], 1280  }
  0x36   :  { %1160 = vsyncadd [#allocation6], 4294966016  ;;  %v77_v0 = vld [vmem:[%s1415_s2] sm:$0xff]  ;;  %v78_v1 = vld [vmem:[%s1415_s2 + $0x8] sm:$0xff]  ;;  %vm198_vm0 = vcmask 523264   ;;  %vm108_vm1 = vcmask 261120   ;;  %v104_v42 = vlaneseq }
  0x37   :  { %v81_v2 = vld [vmem:[%s1416_s3] sm:$0xff]  ;;  %v82_v3 = vld [vmem:[%s1416_s3 + $0x8] sm:$0xff]  ;;  %v79_v5 = vld [vmem:[%s1415_s2 + $0x10] sm:$0xff]  ;;  %v1002_v25 = vpack.c.bf16 %v78_v1, %v77_v0  ;;  %s1168_s23 = smov 96  }
  0x38   :  { %v85_v4 = vadd.f32 %v81_v2, %v77_v0  ;;  %v80_v6 = vld [vmem:[%s1415_s2 + $0x18] sm:$0xff]  ;;  %v86_v7 = vadd.f32 %v82_v3, %v78_v1  ;;  %v83_v8 = vld [vmem:[%s1416_s3 + $0x10] sm:$0xff]  ;;  %v190_v10 = vld [vmem:[#allocation7] sm:$0xff]  ;;  %v1331_v43 = vshrl.u32 %v104_v42, 7 }
  0x39   :  { %v84_v9 = vld [vmem:[%s1416_s3 + $0x18] sm:$0xff]  ;;  %v87_v11 = vadd.f32 %v83_v8, %v79_v5  ;;  %913 = vmatprep.mubr.msk.f32.mxu1 %vm198_vm0, %v190_v10  ;;  %v100_v14 = vld [vmem:[%s1417_s4] sm:$0xff]  ;;  %v101_v15 = vld [vmem:[%s1417_s4 + $0x8] sm:$0xff]  ;;  %v1006_v33 = vpack.c.bf16 %v80_v6, %v79_v5 }
  0x3a   :  { %v88_v12 = vadd.f32 %v84_v9, %v80_v6  ;;  %v994_v13 = vpack.c.bf16 %v86_v7, %v85_v4  ;;  %v986_v17 = vpack.c.bf16 %v101_v15, %v100_v14  ;;  %v102_v18 = vld [vmem:[%s1417_s4 + $0x10] sm:$0xff]  ;;  %v103_v19 = vld [vmem:[%s1417_s4 + $0x18] sm:$0xff]  ;;  %v1304_v21 = vld [vmem:[#allocation2] sm:$0xff]  ;;  %v106_v44 = vsub.s32 0, %v1331_v43 }
  0x3b   :  { %v990_v20 = vpack.c.bf16 %v103_v19, %v102_v18  ;;  %v73_v22 = vld [vmem:[#allocation5] sm:$0xff]  ;;  %v1307_v24 = vld [vmem:[#allocation2 + $0x8] sm:$0xff]  ;;  %v74_v26 = vld [vmem:[#allocation5 + $0x8] sm:$0xff] }
  0x3c   :  { %v998_v16 = vpack.c.bf16 %v88_v12, %v87_v11  ;;  %995 = vmatprep.subr.bf16.mxu1 %v994_v13  ;;  %987 = vmatprep.subr.bf16.mxu0 %v986_v17  ;;  %v75_v23 = vadd.f32 %v73_v22, %v1304_v21  ;;  %v96_v27 = vld [vmem:[%s1420_s7 + $0x30] sm:$0xff]  ;;  %v97_v28 = vld [vmem:[%s1420_s7 + $0x38] sm:$0xff]  ;;  %v98_v30 = vld [vmem:[%s1420_s7 + $0x40] sm:$0xff]  ;;  %v76_v32 = vadd.f32 %v74_v26, %v1307_v24 }
  0x3d   :  { %997 = vmatpush3.bf16.msra.mxu1 %v994_v13  ;;  %989 = vmatpush3.bf16.msra.mxu0 %v986_v17  ;;  %v1010_v29 = vpack.c.bf16 %v97_v28, %v96_v27  ;;  %v99_v31 = vld [vmem:[%s1420_s7 + $0x48] sm:$0xff]  ;;  %v192_v36 = vld [vmem:[#allocation7 + $0x10] sm:$0xff]  ;;  %v193_v37 = vld [vmem:[#allocation7 + $0x18] sm:$0xff] }
  0x3e   :  { %999 = vmatprep.subr.bf16.mxu1 %v998_v16  ;;  %991 = vmatprep.subr.bf16.mxu0 %v990_v20  ;;  %v1014_v34 = vpack.c.bf16 %v99_v31, %v98_v30  ;;  %v191_v35 = vld [vmem:[#allocation7 + $0x8] sm:$0xff]  ;;  %v194_v38 = vld [vmem:[#allocation7 + $0x20] sm:$0xff]  ;;  %v196_v40 = vld [vmem:[#allocation7 + $0x30] sm:$0xff] }
  0x3f   :  { %894 = vmatprep.mubr.msk.f32.mxu0 %vm108_vm1, %v75_v23  ;;  %v195_v39 = vld [vmem:[#allocation7 + $0x28] sm:$0xff]  ;;  %v197_v41 = vld [vmem:[#allocation7 + $0x38] sm:$0xff]  ;;  %v1337_v45 = vld [vmem:[%s1419_s6] sm:$0xff] }
  0x40   :  { %v107_v46 = vrot.slane %v1337_v45, %v106_v44  ;;  %v91_v59 = vld [vmem:[%s1420_s7 + $0x8] sm:$0xff]  ;;  %v90_v60 = vld [vmem:[%s1420_s7] sm:$0xff]  ;;  %v93_v1 = vld [vmem:[%s1420_s7 + $0x18] sm:$0xff] }
  0x41   :  { %1001 = vmatpush3.bf16.msra.mxu1 %v998_v16  ;;  %993 = vmatpush3.bf16.msra.mxu0 %v990_v20  ;;  %v92_v2 = vld [vmem:[%s1420_s7 + $0x10] sm:$0xff]  ;;  %v94_v19 = vld [vmem:[%s1420_s7 + $0x20] sm:$0xff]  ;;  %v1034_v27 = vpack.c.bf16 %v91_v59, %v90_v60 }
  0x42   :  { %1003 = vmatprep.subr.bf16.mxu1 %v1002_v25  ;;  %1011 = vmatprep.subr.bf16.mxu0 %v1010_v29  ;;  %v1038_v28 = vpack.c.bf16 %v93_v1, %v92_v2  ;;  %v826_v44 = vld [vmem:[%s1417_s4 + $0x30] sm:$0xff] }
  0x44   :  { %895 = vmatmul.mubr.msk.f32.vlgmr.msra.gmra.mrb[0].mxu0 %vm108_vm1, %v76_v32 }
  0x45   :  { %1005 = vmatpush3.bf16.msra.mxu1 %v1002_v25  ;;  %1013 = vmatpush3.bf16.msra.mxu0 %v1010_v29  ;;  %v95_v25 = vld [vmem:[%s1420_s7 + $0x28] sm:$0xff] }
  0x46   :  { %1007 = vmatprep.subr.bf16.mxu1 %v1006_v33  ;;  %1015 = vmatprep.subr.bf16.mxu0 %v1014_v34 }
  0x49   :  { %1009 = vmatpush3.bf16.msra.mxu1 %v1006_v33  ;;  %1017 = vmatpush3.bf16.msra.mxu0 %v1014_v34 }
  0x4c   :  { %914 = vmatmul.mubr.msk.f32.vlgmr.msra.gmra.mrb[0].mxu1 %vm198_vm0, %v191_v35 }
  0x4d   :  { %916 = vmatprep.mubr.msk.f32.mxu1 %vm198_vm0, %v192_v36 }
  0x50   :  { %917 = vmatmul.mubr.msk.f32.gmra.mrb[2].mxu1 %vm198_vm0, %v193_v37  ;;  %v824_v37 = vld [vmem:[%s1417_s4 + $0x20] sm:$0xff] }
  0x51   :  { %919 = vmatprep.mubr.msk.f32.mxu1 %vm198_vm0, %v194_v38  ;;  %v825_v38 = vld [vmem:[%s1417_s4 + $0x28] sm:$0xff] }
  0x54   :  { %920 = vmatmul.mubr.msk.f32.gmra.mrb[4].mxu1 %vm198_vm0, %v195_v39 }
  0x55   :  { %922 = vmatprep.mubr.msk.f32.mxu1 %vm198_vm0, %v196_v40  ;;  %v1042_v40 = vpack.c.bf16 %v825_v38, %v824_v37 }
  0x58   :  { %923 = vmatmul.mubr.msk.f32.gmra.mrb[6].mxu1 %vm198_vm0, %v197_v41 }
 0x117   :  { %v896_v47 = vpop.f32.mrb[0].mxu0 }
 0x118   :  { %v187_v48 = vadd.f32 %v896_v47, %v107_v46  ;;  %v181_v49 = vpop.f32.mrb[1].mxu0 }
 0x119   :  { %v182_v57 = vadd.f32 %v181_v49, %v107_v46  ;;  %v827_v46 = vld [vmem:[%s1417_s4 + $0x38] sm:$0xff]  ;;  %s1169_s4 = smov [#allocation8]  }
 0x11a   :  { %v1046_v47 = vpack.c.bf16 %v827_v46, %v826_v44  ;;  %s791_s24 = sshll.u32 %s1169_s4, 4  ;;  %s792_s24 = int_to_ptr.vmem [resolvable:$true] %s791_s24 }
 0x11b   :  { %s1135_s25 = scalar_lea.vmem %s792_s24, 256  ;;  %p1140_p11 = scmp.lt.s32.totalorder %s792_s24, %s792_s24 }
 0x11c   :  { %p1136_p10 = scmp.ne.s32.totalorder %s792_s24, %s1135_s25  ;;  %p1141_p12 = scmp.lt.s32.totalorder %s1135_s25, %s1135_s25 }
 0x11e   :  { %p1142_p13 = por %p1141_p12, %p1140_p11 }
 0x11f   :  { %v915_v50 = vpop.f32.mrb[0].mxu1 }
 0x120   :  { %v289_v51 = vpop.f32.mrb[1].mxu1  ;;  %p1143_p0 = pnand %p1142_p13, %p1136_p10 }
 0x121   :  { %933 = vmatprep.mubr.msk.f32.mxu0 %vm108_vm1, %v289_v51  ;;  %v647_v51 = vsub.s32 1, %v1331_v43 }
 0x122   :  { %934 = vmatmul.mubr.msk.f32.vlgmr.msra.gmra.mrb[2].mxu0 %vm108_vm1, %v915_v50 }
 0x123   :  { %v918_v52 = vpop.f32.mrb[2].mxu1 }
 0x124   :  { %v299_v53 = vpop.f32.mrb[3].mxu1 }
 0x125   :  { %936 = vmatprep.mubr.msk.f32.mxu0 %vm108_vm1, %v299_v53 }
 0x126   :  { %937 = vmatmul.mubr.msk.f32.gmra.mrb[4].mxu0 %vm108_vm1, %v918_v52  ;;  %v648_v52 = vrot.slane %v1337_v45, %v647_v51 }
 0x127   :  { %v921_v54 = vpop.f32.mrb[4].mxu1 }
 0x128   :  { %v309_v55 = vpop.f32.mrb[5].mxu1 }
 0x129   :  { %939 = vmatprep.mubr.msk.f32.mxu0 %vm108_vm1, %v309_v55 }
 0x12a   :  { %940 = vmatmul.mubr.msk.f32.gmra.mrb[6].mxu0 %vm108_vm1, %v921_v54 }
 0x12b   :  { %v924_v56 = vpop.f32.mrb[6].mxu1 }
 0x12c   :  { %v319_v58 = vpop.f32.mrb[7].mxu1 }
 0x12d   :  { %942 = vmatprep.mubr.msk.f32.mxu0 %vm108_vm1, %v319_v58 }
 0x12e   :  { %943 = vmatmul.mubr.msk.f32.gmra.mrb[8].mxu0 %vm108_vm1, %v924_v56 }
 0x12f   :  { %953 = vmatprep.mubr.msk.f32.mxu0 %vm108_vm1, %v182_v57 }
 0x1f5   :  { %v935_v61 = vpop.f32.mrb[2].mxu0 }
 0x1f6   :  { %v458_v62 = vmul.f32 %v935_v61, %v91_v59  ;;  %v418_v63 = vpop.f32.mrb[3].mxu0 }
 0x1f7   :  { %v457_v0 = vmul.f32 %v418_v63, %v90_v60 }
 0x1f9   :  { %v1018_v3 = vpack.c.bf16 %v458_v62, %v457_v0  ;;  %v938_v4 = vpop.f32.mrb[4].mxu0 }
 0x1fa   :  { %v460_v5 = vmul.f32 %v938_v4, %v93_v1  ;;  %v428_v6 = vpop.f32.mrb[5].mxu0 }
 0x1fb   :  { %v459_v7 = vmul.f32 %v428_v6, %v92_v2  ;;  %1019 = vmatprep.subr.bf16.mxu0 %v1018_v3 }
 0x1fc   :  { %1021 = vmatpush3.bf16.msra.mxu0 %v1018_v3 }
 0x1fd   :  { %v1022_v8 = vpack.c.bf16 %v460_v5, %v459_v7  ;;  %v941_v9 = vpop.f32.mrb[6].mxu0 }
 0x1fe   :  { %v462_v10 = vmul.f32 %v941_v9, %v91_v59  ;;  %v438_v11 = vpop.f32.mrb[7].mxu0  ;;  %v741_v59 = vsub.s32 2, %v1331_v43 }
 0x1ff   :  { %1023 = vmatprep.subr.bf16.mxu0 %v1022_v8  ;;  %v461_v12 = vmul.f32 %v438_v11, %v90_v60 }
 0x200   :  { %1025 = vmatpush3.bf16.msra.mxu0 %v1022_v8  ;;  %v742_v60 = vrot.slane %v1337_v45, %v741_v59 }
 0x201   :  { %v1026_v13 = vpack.c.bf16 %v462_v10, %v461_v12  ;;  %v944_v14 = vpop.f32.mrb[8].mxu0  ;;  %1043 = vmatprep.subr.bf16.mxu0 %v1042_v40 }
 0x202   :  { %v464_v15 = vmul.f32 %v944_v14, %v93_v1  ;;  %v448_v16 = vpop.f32.mrb[9].mxu0 }
 0x203   :  { %954 = vmatmul.mubr.msk.f32.vlgmr.msra.gmra.mrb[10].mxu0 %vm108_vm1, %v187_v48  ;;  %v463_v17 = vmul.f32 %v448_v16, %v92_v2  ;;  %1027 = vmatprep.subr.bf16.mxu1 %v1026_v13 }
 0x204   :  { %1029 = vmatpush3.bf16.xpose.msra.mxu1 %v1026_v13  ;;  %1045 = vmatpush3.bf16.msra.mxu0 %v1042_v40 }
 0x205   :  { %v1030_v18 = vpack.c.bf16 %v464_v15, %v463_v17  ;;  %1047 = vmatprep.subr.bf16.mxu0 %v1046_v47 }
 0x207   :  { %1031 = vmatprep.subr.bf16.mxu1 %v1030_v18 }
 0x208   :  { %1049 = vmatpush3.bf16.msra.mxu0 %v1046_v47 }
 0x20c   :  { %1033 = vmatpush3.bf16.xpose.msra.mxu1 %v1030_v18 }
 0x20d   :  { %1035 = vmatprep.subr.bf16.mxu1 %v1034_v27 }
 0x214   :  { %1037 = vmatpush3.bf16.xpose.msra.mxu1 %v1034_v27 }
 0x215   :  { %1039 = vmatprep.subr.bf16.mxu1 %v1038_v28 }
 0x21c   :  { %1041 = vmatpush3.bf16.xpose.msra.mxu1 %v1038_v28 }
 0x2d6   :  { %v955_v20 = vpop.f32.mrb[10].mxu0 }
 0x2d7   :  { %v537_v22 = vpop.f32.mrb[11].mxu0  ;;  %v543_v26 = vadd.f32 %v955_v20, %v95_v25  ;;  %v780_v20 = vsub.s32 4, %v1331_v43 }
 0x2d8   :  { %v538_v23 = vadd.f32 %v537_v22, %v94_v19  ;;  %v774_v19 = vsub.s32 3, %v1331_v43 }
 0x2da   :  { %546 = vmax.xlane.f32.xlu0 %v538_v23  ;;  %v775_v22 = vrot.slane %v1337_v45, %v774_v19 }
 0x2de   :  { %548 = vmax.xlane.f32.xlu0 %v543_v26 }
 0x367   :  { %v547_v29 = vpop.xlane.xlu0 %546 }
 0x368   :  { %v550_v30 = vsub.f32 %v538_v23, %v547_v29 }
 0x36a   :  { %v552_v31 = vmul.f32 1.442695, %v550_v30 }
 0x36b   :  { %v549_v32 = vpop.xlane.xlu0 %548 }
 0x36c   :  { %1057 = vpow2.f32 %v552_v31  ;;  %v551_v33 = vsub.f32 %v543_v26, %v549_v32  ;;  %v781_v26 = vrot.slane %v1337_v45, %v780_v20 }
 0x36e   :  { %v554_v34 = vmul.f32 1.442695, %v551_v33 }
 0x370   :  { %1059 = vpow2.f32 %v554_v34 }
 0x376   :  { %v1058_v35 = vpop.eup %1057 }
 0x377   :  { %972 = vmatprep.mubr.f32.mxu1 %v1058_v35 }
 0x37a   :  { %v1060_v36 = vpop.eup %1059 }
 0x37b   :  { %973 = vmatmul.mubr.f32.vlgmr.msra.gmra.mrb[8].mxu1 %v1060_v36 }
 0x44e   :  { %v974_v39 = vpop.f32.mrb[8].mxu1 }
 0x44f   :  { %v622_v41 = vpop.f32.mrb[9].mxu1  ;;  %v632_v48 = vmax.f32 %v974_v39, 1e-30 }
 0x450   :  { %v631_v42 = vmax.f32 %v622_v41, 1e-30 }
 0x452   :  { %635 = vrot.lane.b32.xlu1 %v631_v42, %s1168_s23 }
 0x456   :  { %637 = vrot.lane.b32.xlu1 %v632_v48, %s1168_s23 }
 0x4c4   :  { %v636_v49 = vpop.permute.xlu1 %635 }
 0x4c5   :  { %1061 = vrcp.f32 %v636_v49 }
 0x4c8   :  { %v638_v50 = vpop.permute.xlu1 %637 }
 0x4c9   :  { %1063 = vrcp.f32 %v638_v50 }
 0x4cf   :  { %v1062_v53 = vpop.eup %1061 }
 0x4d0   :  { %v642_v54 = vmul.f32 %v1062_v53, %v622_v41 }
 0x4d2   :  { %v649_v55 = vadd.f32 %v648_v52, %v642_v54 }
 0x4d3   :  { %v1064_v56 = vpop.eup %1063 }
 0x4d4   :  { %v644_v57 = vmul.f32 %v1064_v56, %v974_v39  ;;  %983 = vmatprep.mubr.msk.f32.mxu0 %vm108_vm1, %v649_v55 }
 0x4d6   :  { %v650_v58 = vadd.f32 %v648_v52, %v644_v57 }
 0x4d8   :  { %984 = vmatmul.mubr.msk.f32.vlgmr.msra.gmra.mrb[12].mxu0 %vm108_vm1, %v650_v58 }
 0x5ab   :  { %v985_v61 = vpop.f32.mrb[12].mxu0 }
 0x5ac   :  { %v738_v62 = vadd.f32 %v985_v61, %v1307_v24  ;;  %v728_v63 = vpop.f32.mrb[13].mxu0 }
 0x5ad   :  { %v737_v0 = vadd.f32 %v728_v63, %v1304_v21 }
 0x5ae   :  { %v744_v1 = vadd.f32 %v742_v60, %v738_v62 }
 0x5af   :  { %v743_v2 = vadd.f32 %v742_v60, %v737_v0 }
 0x5b0   :  { %v748_v3 = vsel %vm108_vm1, %v744_v1, 0.0 }
 0x5b1   :  { %749 = vadd.xlane.f32.xlu1 %v748_v3  ;;  %v745_v4 = vsel %vm108_vm1, %v743_v2, 0.0 }
 0x5b2   :  { %746 = vadd.xlane.f32.xlu0 %v745_v4 }
 0x63e   :  { %v750_v5 = vpop.xlane.xlu1 %749 }
 0x63f   :  { %v753_v6 = vmul.f32 0.03125, %v750_v5  ;;  %v747_v7 = vpop.xlane.xlu0 %746 }
 0x640   :  { %v752_v8 = vmul.f32 0.03125, %v747_v7 }
 0x641   :  { %v755_v9 = vsub.f32 %v744_v1, %v753_v6 }
 0x642   :  { %v754_v10 = vsub.f32 %v743_v2, %v752_v8 }
 0x643   :  { %v757_v12 = vmul.f32 %v755_v9, %v755_v9 }
 0x644   :  { %v756_v11 = vmul.f32 %v754_v10, %v754_v10 }
 0x645   :  { %v761_v21 = vsel %vm108_vm1, %v757_v12, 0.0 }
 0x646   :  { %v758_v24 = vsel %vm108_vm1, %v756_v11, 0.0 }
 0x647   :  { %759 = vadd.xlane.f32.xlu0 %v758_v24 }
 0x64b   :  { %762 = vadd.xlane.f32.xlu0 %v761_v21 }
 0x6d4   :  { %v760_v13 = vpop.xlane.xlu0 %759 }
 0x6d5   :  { %v764_v14 = vmul.f32 0.03125, %v760_v13 }
 0x6d7   :  { %v766_v15 = vadd.f32 1e-05, %v764_v14 }
 0x6d8   :  { %v763_v16 = vpop.xlane.xlu0 %762 }
 0x6d9   :  { %1065 = vrsqrt.f32 %v766_v15  ;;  %v765_v17 = vmul.f32 0.03125, %v763_v16 }
 0x6db   :  { %v767_v18 = vadd.f32 1e-05, %v765_v17 }
 0x6dd   :  { %1067 = vrsqrt.f32 %v767_v18 }
 0x6e3   :  { %v1066_v23 = vpop.eup %1065 }
 0x6e4   :  { %v770_v25 = vmul.f32 %v1066_v23, %v754_v10 }
 0x6e6   :  { %v776_v27 = vmul.f32 %v775_v22, %v770_v25 }
 0x6e7   :  { %v1068_v28 = vpop.eup %1067 }
 0x6e8   :  { %v771_v29 = vmul.f32 %v1068_v28, %v755_v9  ;;  %v782_v30 = vadd.f32 %v781_v26, %v776_v27 }
 0x6ea   :  { %v777_v31 = vmul.f32 %v775_v22, %v771_v29  ;;  %784 = vst.msk [vmem:[#allocation8] sm:$0xff] %vm108_vm1, %v782_v30 }
 0x6ec   :  { %v783_v32 = vadd.f32 %v781_v26, %v777_v31 }
 0x6ee   :  { %785 = vst.msk [vmem:[#allocation8 + $0x8] sm:$0xff] %vm108_vm1, %v783_v32 }
 0x6ef   :  { %1146 = shalt.err (!%p1143_p0)
}
 0x6f0   :  { %s1147_s29 = scalar_lea.hbm %s1421_s8, 256 }
 0x6f1   :  { %p1148_p1 = scmp.ne.s32.totalorder %s1421_s8, %s1147_s29  ;;  %p1151_p2 = scmp.lt.u32.totalorder %s1147_s29, %s1421_s8 }
 0x6f3   :  { %p1153_p3 = pnand %p1151_p2, %p1148_p1 }
 0x6f5   :  { %1156 = shalt.err (!%p1153_p3)
}
 0x6f6   :  { %797 = dma.vmem_to_hbm [thread:$0]  %s792_s24, 256, %s1421_s8, [#allocation4], %s1165_s17, %s1165_s17, %s1166_s18  }
 0x6f7   :  { %1161 = dma.done.wait [#allocation4], 256  }
 0x6f8   :  { %1162 = vsyncadd [#allocation4], 4294967040 }
 0x6f9   :  { %801 = vsyncpa [#allocation3], 1 }
 0x6fa   :  { %802 = vsyncpa [#allocation6], 1 }
 0x6fb   :  { %803 = vsyncpa [#allocation4], 1 }

</bundles_post_ra>
